<compile_context>
chip_gen: v5e
topology: v5e:2x2
jax: 0.10.0
libtpu: 0.0.40
codegen_flags: <defaults>
</compile_context>

<pallas_src>
import functools
import math

import jax
import jax.numpy as jnp
import numpy as np
from jax.experimental import pallas as pl
from jax.experimental.pallas import tpu as pltpu


_TRUE_MH = 125000.0
_MAX_DIFF = 125000.0
_STRETCH = math.sqrt(math.log(1.0 / 0.05))
_MASS_SCALE = 1.0e-5   # corr is affine-invariant; keeps f32 raw moments sane
_LANES = 128
_N_MOMENTS = 8


# ----------------------------------------------------------------------------
# Pallas kernel: one event block per grid step -> 8 lane-resident partial sums.
# ----------------------------------------------------------------------------
def _hep_loss_kernel(x_ref, t_ref, w_ref, mwh_ref, *rest, n, events_per_block,
                     weight_by_mH, mass_center):
    if weight_by_mH:
        mhs_ref, out_ref = rest
    else:
        (out_ref,) = rest

    i = pl.program_id(0)

    x = x_ref[...].astype(jnp.float32)      # (C, TNb, 128) class-major, dense
    t = t_ref[...].astype(jnp.float32)      # (C, TNb, 128)
    w = w_ref[...].astype(jnp.float32)      # (TNb, 128)
    mwh = mwh_ref[...].astype(jnp.float32)  # (TNb, 128)

    tnb = w.shape[0]

    # Valid-event mask: covers the <=127-event pad used for the free
    # (N,) -> (N/128, 128) reshape and the ragged final block.  OOB block
    # contents are undefined, so NaN/Inf garbage is removed with jnp.where
    # (selection, not multiplication) before anything reaches the sums.
    row = jax.lax.broadcasted_iota(jnp.int32, (tnb, _LANES), 0)
    lane = jax.lax.broadcasted_iota(jnp.int32, (tnb, _LANES), 1)
    valid = (i * events_per_block + row * _LANES + lane) < n

    # --- optional mH-based weight scaling (scale_loss_by_mH) -----------------
    if weight_by_mH:
        mhs = mhs_ref[...].astype(jnp.float32)
        z = (mhs - _TRUE_MH) * (_STRETCH / _MAX_DIFF)
        w = w * jnp.exp(-(z * z))           # 1 / exp(z**2)
    w = jnp.where(valid, w, 0.0)

    # --- cross entropy with probability targets ------------------------------
    # Class axis is the leading axis, so per-class reductions are plain dense
    # VPU ops (no cross-lane / cross-sublane work).
    x_max = jnp.max(x, axis=0, keepdims=True)             # (1, TNb, 128)
    shifted = x - x_max                                    # (C, TNb, 128)
    lse = jnp.log(jnp.sum(jnp.exp(shifted), axis=0))       # (TNb, 128)
    # ce = -sum_c t*(shifted - lse) = lse*sum_c(t) - sum_c(t*shifted)
    ce = lse * jnp.sum(t, axis=0) - jnp.sum(t * shifted, axis=0)
    ce = jnp.where(valid, ce, 0.0)

    # --- correlation ingredients over background events ----------------------
    # bkg: class 0 is the row max <=> argmax == 0 (first-index tie behaviour).
    bkg = (t[0] >= jnp.max(t, axis=0)).astype(jnp.float32)
    cx = jnp.where(valid, 1.0 - x[0], 0.0)                 # 1 - inputs[:, 0]
    cy = jnp.where(valid, (mwh - mass_center) * _MASS_SCALE, 0.0)
    cw = w * bkg                                           # mask via weights

    cwx = cw * cx
    cwy = cw * cy
    rows = (
        w,          # 0: sum w
        ce * w,     # 1: sum ce*w
        cw,         # 2: sum cw
        cwx,        # 3: sum cw*cx
        cwy,        # 4: sum cw*cy
        cwx * cy,   # 5: sum cw*cx*cy
        cwx * cx,   # 6: sum cw*cx^2
        cwy * cy,   # 7: sum cw*cy^2
    )
    # Reduce only across sublane rows (pure VPU adds); the cross-lane and
    # cross-block reductions + scalar finalisation happen in the wrapper, so
    # this grid axis stays fully parallel (v7x dual-TensorCore friendly).
    for j, r in enumerate(rows):
        out_ref[j, :] = jnp.sum(r, axis=0)


# ----------------------------------------------------------------------------
# Wrapper
# ----------------------------------------------------------------------------
def hep_loss_pallas(inputs, targets, weights, mWh, mHs=None, *,
                    weight_by_mH=False, alpha=1.0, target_mass=125,
                    apply_correlation_penalty=False,
                    class_major_inputs=False,
                    event_block=None,
                    target_block_bytes=4 * 1024 * 1024,
                    vmem_limit_bytes=48 * 1024 * 1024):
    if class_major_inputs:
        c, n = inputs.shape
    else:
        n, c = inputs.shape
    if weight_by_mH and mHs is None:
        raise ValueError("mHs is required when weight_by_mH=True")

    rows128 = pl.cdiv(n, _LANES)        # event rows of 128 lanes
    n_pad = rows128 * _LANES
    pad = n_pad - n                     # <= 127 events, masked in-kernel

    # ---- relayout to class-major, (rows, 128)-folded event axis -------------
    # TODO(synk): producing class-major data upstream (class_major_inputs=True,
    #             n % 128 == 0) makes this section zero-copy; with (N, C)
    #             module-convention inputs one fused transpose(+pad) pass
    #             remains (an in-kernel XLU transpose of (TN, C) blocks is the
    #             other option from the review).
    if class_major_inputs:
        x_cm, t_cm = inputs, targets
    else:
        x_cm, t_cm = inputs.T, targets.T
    if pad:
        x_cm = jnp.pad(x_cm, ((0, 0), (0, pad)))
        t_cm = jnp.pad(t_cm, ((0, 0), (0, pad)))
        weights = jnp.pad(weights, (0, pad))
        mWh = jnp.pad(mWh, (0, pad))
        if weight_by_mH:
            mHs = jnp.pad(mHs, (0, pad))
    # Free reshapes (row-major split of the minor dim); native dtypes kept —
    # the kernel upcasts, so bf16 callers get halved HBM traffic.
    x_cm = x_cm.reshape(c, rows128, _LANES)
    t_cm = t_cm.reshape(c, rows128, _LANES)
    operands = [x_cm, t_cm,
                weights.reshape(rows128, _LANES),
                mWh.reshape(rows128, _LANES)]
    if weight_by_mH:
        operands.append(mHs.reshape(rows128, _LANES))

    # ---- event-block size: amortise the ~0.35 us/step pipeline overhead -----
    bytes_per_event = (c * (inputs.dtype.itemsize + targets.dtype.itemsize)
                       + weights.dtype.itemsize + mWh.dtype.itemsize
                       + (mHs.dtype.itemsize if weight_by_mH else 0))
    if event_block is not None:
        tnb = max(1, int(event_block) // _LANES)
    else:
        tnb = max(1, int(target_block_bytes) // (bytes_per_event * _LANES))
    if tnb >= rows128:
        tnb = rows128                       # single full-extent block
    else:
        tnb = max(8, (tnb // 8) * 8)        # (8, 128) block-shape constraint
        tnb = min(tnb, rows128)
    events_per_block = tnb * _LANES
    num_blocks = pl.cdiv(rows128, tnb)

    kernel = functools.partial(
        _hep_loss_kernel,
        n=int(n),
        events_per_block=int(events_per_block),
        weight_by_mH=bool(weight_by_mH),
        mass_center=float(target_mass) * 1000.0)

    cls_spec = pl.BlockSpec((c, tnb, _LANES), lambda i: (0, i, 0))
    vec_spec = pl.BlockSpec((tnb, _LANES), lambda i: (i, 0))
    in_specs = [cls_spec, cls_spec, vec_spec, vec_spec]
    if weight_by_mH:
        in_specs.append(vec_spec)

    partials = pl.pallas_call(
        kernel,
        out_shape=jax.ShapeDtypeStruct((num_blocks * _N_MOMENTS, _LANES),
                                       jnp.float32),
        grid=(num_blocks,),
        in_specs=in_specs,
        out_specs=pl.BlockSpec((_N_MOMENTS, _LANES), lambda i: (i, 0)),
        compiler_params=pltpu.CompilerParams(
            dimension_semantics=("parallel",),
            vmem_limit_bytes=int(vmem_limit_bytes)),
    )(*operands)

    # ---- finalise in plain JAX (3 scalars; keeps the grid axis parallel) ----
    m = partials.reshape(num_blocks, _N_MOMENTS, _LANES).sum(axis=(0, 2))
    w_sum = m[0]
    base_loss = m[1] / w_sum
    sw = m[2]
    mx = m[3] / sw
    my = m[4] / sw
    cov = m[5] / sw - mx * my
    var_x = m[6] / sw - mx * mx
    var_y = m[7] / sw - my * my
    # corr^2 = cov^2 / (var_x * var_y); no sqrt needed.  No zero guards, to
    # match the PyTorch module (NaN if there are no background events).
    corr_loss = (cov * cov) / (var_x * var_y)

    if apply_correlation_penalty:
        total = base_loss + alpha * corr_loss
    else:
        total = base_loss
    return total, base_loss, corr_loss


# ----------------------------------------------------------------------------
# Pure-JAX reference (mirrors the PyTorch forward)
# ----------------------------------------------------------------------------
def hep_loss_ref(inputs, targets, weights, mWh, mHs, *,
                 weight_by_mH=False, alpha=1.0,
                 apply_correlation_penalty=False):
    w = weights
    if weight_by_mH:
        w = w * (1.0 / jnp.exp(((mHs - _TRUE_MH) / _MAX_DIFF * _STRETCH) ** 2))

    log_probs = jax.nn.log_softmax(inputs, axis=-1)
    ce = -jnp.sum(targets * log_probs, axis=-1)
    base = jnp.sum(ce * w) / jnp.sum(w)

    bkg = (jnp.argmax(targets, axis=-1) == 0).astype(jnp.float32)
    cx = 1.0 - inputs[:, 0]
    cy = mWh
    cw = w * bkg
    sw = jnp.sum(cw)
    mx = jnp.sum(cw * cx) / sw
    my = jnp.sum(cw * cy) / sw
    cov = jnp.sum(cw * (cx - mx) * (cy - my)) / sw
    vx = jnp.sum(cw * (cx - mx) ** 2) / sw
    vy = jnp.sum(cw * (cy - my) ** 2) / sw
    corr_loss = (cov / jnp.sqrt(vx * vy)) ** 2

    total = base + alpha * corr_loss if apply_correlation_penalty else base
    return total, base, corr_loss


# ----------------------------------------------------------------------------
# Main
# ----------------------------------------------------------------------------
if __name__ == "__main__":
    def make_data(key, n, c):
        k1, k2, k3, k4, k5 = jax.random.split(key, 5)
        inputs = jax.random.normal(k1, (n, c), dtype=jnp.float32)
        classes = jax.random.randint(k2, (n,), 0, c)
        targets = jax.nn.one_hot(classes, c, dtype=jnp.float32)
        weights = jax.random.uniform(k3, (n,), dtype=jnp.float32,
                                     minval=0.5, maxval=1.5)
        mWh = jax.random.uniform(k4, (n,), dtype=jnp.float32,
                                 minval=50000.0, maxval=300000.0)
        mHs = 125000.0 + 40000.0 * jax.random.normal(k5, (n,), dtype=jnp.float32)
        return inputs, targets, weights, mWh, mHs

    key = jax.random.PRNGKey(0)
    cases = [
        # single block, both optional branches on, (N, C) module-layout inputs
        dict(n=512, c=8, kwargs=dict(weight_by_mH=True, alpha=1.0,
                                     apply_correlation_penalty=True)),
        # multi-block parallel grid with a ragged / padded tail (grid=(3,))
        dict(n=2348, c=4, kwargs=dict(weight_by_mH=False, alpha=0.5,
                                      apply_correlation_penalty=False,
                                      event_block=1024)),
        # class-major fast path (no wrapper transpose copy, n % 128 == 0)
        dict(n=640, c=8, kwargs=dict(weight_by_mH=False, alpha=1.0,
                                     apply_correlation_penalty=True,
                                     class_major_inputs=True)),
    ]

    for case in cases:
        key, sub = jax.random.split(key)
        inputs, targets, weights, mWh, mHs = make_data(sub, case["n"], case["c"])

        kw = dict(case["kwargs"])
        class_major = kw.pop("class_major_inputs", False)
        if class_major:
            x_in, t_in = inputs.T, targets.T
        else:
            x_in, t_in = inputs, targets

        total, base, corr = hep_loss_pallas(
            x_in, t_in, weights, mWh, mHs,
            target_mass=125, class_major_inputs=class_major, **kw)
        jax.block_until_ready(total)

        ref_kw = {k: v for k, v in case["kwargs"].items()
                  if k in ("weight_by_mH", "alpha", "apply_correlation_penalty")}
        total_r, base_r, corr_r = hep_loss_ref(
            inputs, targets, weights, mWh, mHs, **ref_kw)

        np.testing.assert_allclose(np.asarray(total), np.asarray(total_r),
                                   rtol=2e-4, atol=1e-5)
        np.testing.assert_allclose(np.asarray(base), np.asarray(base_r),
                                   rtol=2e-4, atol=1e-5)
        np.testing.assert_allclose(np.asarray(corr), np.asarray(corr_r),
                                   rtol=2e-4, atol=1e-5)

    print("KERNEL_OK")
</pallas_src>

<mosaic_0001>
module attributes {stable_mosaic.version = 11 : i64} {
  func.func @_hep_loss_kernel(%arg0: i32, %arg1: memref<8x4x128xf32, #tpu.memory_space<vmem>>, %arg2: memref<8x4x128xf32, #tpu.memory_space<vmem>>, %arg3: memref<4x128xf32, #tpu.memory_space<vmem>>, %arg4: memref<4x128xf32, #tpu.memory_space<vmem>>, %arg5: memref<4x128xf32, #tpu.memory_space<vmem>>, %arg6: memref<8x128xf32, #tpu.memory_space<vmem>>) attributes {dimension_semantics = [#tpu.dimension_semantics<parallel>], iteration_bounds = array<i64: 1>, scalar_prefetch = 0 : i64, scratch_operands = 0 : i64, tpu.core_type = #tpu.core_type<tc>, window_params = [{transform_indices = @transform_0, window_bounds = array<i64: 8, 4, 128>}, {transform_indices = @transform_1, window_bounds = array<i64: 8, 4, 128>}, {transform_indices = @transform_2, window_bounds = array<i64: 4, 128>}, {transform_indices = @transform_3, window_bounds = array<i64: 4, 128>}, {transform_indices = @transform_4, window_bounds = array<i64: 4, 128>}, {transform_indices = @transform_5, window_bounds = array<i64: 8, 128>}]} {
    %c0 = arith.constant 0 : index
    %c0_0 = arith.constant 0 : index
    %c0_1 = arith.constant 0 : index
    %0 = vector.load %arg1[%c0, %c0_0, %c0_1] : memref<8x4x128xf32, #tpu.memory_space<vmem>>, vector<8x4x128xf32>
    %c0_2 = arith.constant 0 : index
    %c0_3 = arith.constant 0 : index
    %c0_4 = arith.constant 0 : index
    %1 = vector.load %arg2[%c0_2, %c0_3, %c0_4] : memref<8x4x128xf32, #tpu.memory_space<vmem>>, vector<8x4x128xf32>
    %c0_5 = arith.constant 0 : index
    %c0_6 = arith.constant 0 : index
    %2 = vector.load %arg3[%c0_5, %c0_6] : memref<4x128xf32, #tpu.memory_space<vmem>>, vector<4x128xf32>
    %c0_7 = arith.constant 0 : index
    %c0_8 = arith.constant 0 : index
    %3 = vector.load %arg4[%c0_7, %c0_8] : memref<4x128xf32, #tpu.memory_space<vmem>>, vector<4x128xf32>
    %4 = tpu.iota {dimensions = array<i32: 0>} : vector<4x128xi32>
    %5 = tpu.iota {dimensions = array<i32: 1>} : vector<4x128xi32>
    %c512_i32 = arith.constant 512 : i32
    %6 = arith.muli %arg0, %c512_i32 : i32
    %c128_i32 = arith.constant 128 : i32
    %7 = vector.broadcast %c128_i32 : i32 to vector<4x128xi32>
    %8 = arith.muli %4, %7 : vector<4x128xi32>
    %9 = vector.broadcast %6 : i32 to vector<4x128xi32>
    %10 = arith.addi %9, %8 : vector<4x128xi32>
    %11 = arith.addi %10, %5 : vector<4x128xi32>
    %c512_i32_9 = arith.constant 512 : i32
    %12 = vector.broadcast %c512_i32_9 : i32 to vector<4x128xi32>
    %13 = arith.cmpi slt, %11, %12 : vector<4x128xi32>
    %c0_10 = arith.constant 0 : index
    %c0_11 = arith.constant 0 : index
    %14 = vector.load %arg5[%c0_10, %c0_11] : memref<4x128xf32, #tpu.memory_space<vmem>>, vector<4x128xf32>
    %cst = arith.constant 1.250000e+05 : f32
    %15 = vector.broadcast %cst : f32 to vector<4x128xf32>
    %16 = arith.subf %14, %15 : vector<4x128xf32>
    %cst_12 = arith.constant 1.38465466E-5 : f32
    %17 = vector.broadcast %cst_12 : f32 to vector<4x128xf32>
    %18 = arith.mulf %16, %17 : vector<4x128xf32>
    %19 = arith.mulf %18, %18 : vector<4x128xf32>
    %cst_13 = arith.constant 0.000000e+00 : f32
    %20 = vector.broadcast %cst_13 : f32 to vector<4x128xf32>
    %21 = arith.subf %20, %19 : vector<4x128xf32>
    %22 = math.exp %21 : vector<4x128xf32>
    %23 = arith.mulf %2, %22 : vector<4x128xf32>
    %cst_14 = arith.constant 0.000000e+00 : f32
    %24 = vector.broadcast %cst_14 : f32 to vector<4x128xf32>
    %25 = arith.select %13, %23, %24 : vector<4x128xi1>, vector<4x128xf32>
    %cst_15 = arith.constant dense<0xFF800000> : vector<4x128xf32>
    %26 = vector.multi_reduction <maximumf>, %0, %cst_15 [0] : vector<8x4x128xf32> to vector<4x128xf32>
    %27 = vector.shape_cast %26 : vector<4x128xf32> to vector<1x4x128xf32>
    %28 = vector.broadcast %27 : vector<1x4x128xf32> to vector<8x4x128xf32>
    %29 = arith.subf %0, %28 : vector<8x4x128xf32>
    %30 = math.exp %29 : vector<8x4x128xf32>
    %cst_16 = arith.constant dense<0.000000e+00> : vector<4x128xf32>
    %31 = vector.multi_reduction <add>, %30, %cst_16 [0] : vector<8x4x128xf32> to vector<4x128xf32>
    %32 = math.log %31 : vector<4x128xf32>
    %cst_17 = arith.constant dense<0.000000e+00> : vector<4x128xf32>
    %33 = vector.multi_reduction <add>, %1, %cst_17 [0] : vector<8x4x128xf32> to vector<4x128xf32>
    %34 = arith.mulf %32, %33 : vector<4x128xf32>
    %35 = arith.mulf %1, %29 : vector<8x4x128xf32>
    %cst_18 = arith.constant dense<0.000000e+00> : vector<4x128xf32>
    %36 = vector.multi_reduction <add>, %35, %cst_18 [0] : vector<8x4x128xf32> to vector<4x128xf32>
    %37 = arith.subf %34, %36 : vector<4x128xf32>
    %cst_19 = arith.constant 0.000000e+00 : f32
    %38 = vector.broadcast %cst_19 : f32 to vector<4x128xf32>
    %39 = arith.select %13, %37, %38 : vector<4x128xi1>, vector<4x128xf32>
    %40 = vector.extract_strided_slice %1 {offsets = [0, 0, 0], sizes = [1, 4, 128], strides = [1, 1, 1]} : vector<8x4x128xf32> to vector<1x4x128xf32>
    %41 = vector.shape_cast %40 : vector<1x4x128xf32> to vector<4x128xf32>
    %cst_20 = arith.constant dense<0xFF800000> : vector<4x128xf32>
    %42 = vector.multi_reduction <maximumf>, %1, %cst_20 [0] : vector<8x4x128xf32> to vector<4x128xf32>
    %43 = arith.cmpf oge, %41, %42 : vector<4x128xf32>
    %44 = arith.extui %43 : vector<4x128xi1> to vector<4x128xi32>
    %45 = arith.sitofp %44 : vector<4x128xi32> to vector<4x128xf32>
    %46 = vector.extract_strided_slice %0 {offsets = [0, 0, 0], sizes = [1, 4, 128], strides = [1, 1, 1]} : vector<8x4x128xf32> to vector<1x4x128xf32>
    %47 = vector.shape_cast %46 : vector<1x4x128xf32> to vector<4x128xf32>
    %cst_21 = arith.constant 1.000000e+00 : f32
    %48 = vector.broadcast %cst_21 : f32 to vector<4x128xf32>
    %49 = arith.subf %48, %47 : vector<4x128xf32>
    %cst_22 = arith.constant 0.000000e+00 : f32
    %50 = vector.broadcast %cst_22 : f32 to vector<4x128xf32>
    %51 = arith.select %13, %49, %50 : vector<4x128xi1>, vector<4x128xf32>
    %cst_23 = arith.constant 1.250000e+05 : f32
    %52 = vector.broadcast %cst_23 : f32 to vector<4x128xf32>
    %53 = arith.subf %3, %52 : vector<4x128xf32>
    %cst_24 = arith.constant 9.99999974E-6 : f32
    %54 = vector.broadcast %cst_24 : f32 to vector<4x128xf32>
    %55 = arith.mulf %53, %54 : vector<4x128xf32>
    %cst_25 = arith.constant 0.000000e+00 : f32
    %56 = vector.broadcast %cst_25 : f32 to vector<4x128xf32>
    %57 = arith.select %13, %55, %56 : vector<4x128xi1>, vector<4x128xf32>
    %58 = arith.mulf %25, %45 : vector<4x128xf32>
    %59 = arith.mulf %58, %51 : vector<4x128xf32>
    %60 = arith.mulf %58, %57 : vector<4x128xf32>
    %61 = arith.mulf %39, %25 : vector<4x128xf32>
    %62 = arith.mulf %59, %57 : vector<4x128xf32>
    %63 = arith.mulf %59, %51 : vector<4x128xf32>
    %64 = arith.mulf %60, %57 : vector<4x128xf32>
    %cst_26 = arith.constant dense<0.000000e+00> : vector<128xf32>
    %65 = vector.multi_reduction <add>, %25, %cst_26 [0] : vector<4x128xf32> to vector<128xf32>
    %c0_27 = arith.constant 0 : index
    %c0_28 = arith.constant 0 : index
    %66 = vector.load %arg6[%c0_27, %c0_28] : memref<8x128xf32, #tpu.memory_space<vmem>>, vector<1x128xf32>
    %67 = vector.shape_cast %66 : vector<1x128xf32> to vector<128xf32>
    %68 = vector.shape_cast %65 : vector<128xf32> to vector<1x128xf32>
    tpu.vector_store %arg6[%c0_27, %c0_28], %68 {strides = array<i32>} : memref<8x128xf32, #tpu.memory_space<vmem>>, vector<1x128xf32>,
    %cst_29 = arith.constant dense<0.000000e+00> : vector<128xf32>
    %69 = vector.multi_reduction <add>, %61, %cst_29 [0] : vector<4x128xf32> to vector<128xf32>
    %c1 = arith.constant 1 : index
    %c0_30 = arith.constant 0 : index
    %70 = vector.load %arg6[%c1, %c0_30] : memref<8x128xf32, #tpu.memory_space<vmem>>, vector<1x128xf32>
    %71 = vector.shape_cast %70 : vector<1x128xf32> to vector<128xf32>
    %72 = vector.shape_cast %69 : vector<128xf32> to vector<1x128xf32>
    tpu.vector_store %arg6[%c1, %c0_30], %72 {strides = array<i32>} : memref<8x128xf32, #tpu.memory_space<vmem>>, vector<1x128xf32>,
    %cst_31 = arith.constant dense<0.000000e+00> : vector<128xf32>
    %73 = vector.multi_reduction <add>, %58, %cst_31 [0] : vector<4x128xf32> to vector<128xf32>
    %c2 = arith.constant 2 : index
    %c0_32 = arith.constant 0 : index
    %74 = vector.load %arg6[%c2, %c0_32] : memref<8x128xf32, #tpu.memory_space<vmem>>, vector<1x128xf32>
    %75 = vector.shape_cast %74 : vector<1x128xf32> to vector<128xf32>
    %76 = vector.shape_cast %73 : vector<128xf32> to vector<1x128xf32>
    tpu.vector_store %arg6[%c2, %c0_32], %76 {strides = array<i32>} : memref<8x128xf32, #tpu.memory_space<vmem>>, vector<1x128xf32>,
    %cst_33 = arith.constant dense<0.000000e+00> : vector<128xf32>
    %77 = vector.multi_reduction <add>, %59, %cst_33 [0] : vector<4x128xf32> to vector<128xf32>
    %c3 = arith.constant 3 : index
    %c0_34 = arith.constant 0 : index
    %78 = vector.load %arg6[%c3, %c0_34] : memref<8x128xf32, #tpu.memory_space<vmem>>, vector<1x128xf32>
    %79 = vector.shape_cast %78 : vector<1x128xf32> to vector<128xf32>
    %80 = vector.shape_cast %77 : vector<128xf32> to vector<1x128xf32>
    tpu.vector_store %arg6[%c3, %c0_34], %80 {strides = array<i32>} : memref<8x128xf32, #tpu.memory_space<vmem>>, vector<1x128xf32>,
    %cst_35 = arith.constant dense<0.000000e+00> : vector<128xf32>
    %81 = vector.multi_reduction <add>, %60, %cst_35 [0] : vector<4x128xf32> to vector<128xf32>
    %c4 = arith.constant 4 : index
    %c0_36 = arith.constant 0 : index
    %82 = vector.load %arg6[%c4, %c0_36] : memref<8x128xf32, #tpu.memory_space<vmem>>, vector<1x128xf32>
    %83 = vector.shape_cast %82 : vector<1x128xf32> to vector<128xf32>
    %84 = vector.shape_cast %81 : vector<128xf32> to vector<1x128xf32>
    tpu.vector_store %arg6[%c4, %c0_36], %84 {strides = array<i32>} : memref<8x128xf32, #tpu.memory_space<vmem>>, vector<1x128xf32>,
    %cst_37 = arith.constant dense<0.000000e+00> : vector<128xf32>
    %85 = vector.multi_reduction <add>, %62, %cst_37 [0] : vector<4x128xf32> to vector<128xf32>
    %c5 = arith.constant 5 : index
    %c0_38 = arith.constant 0 : index
    %86 = vector.load %arg6[%c5, %c0_38] : memref<8x128xf32, #tpu.memory_space<vmem>>, vector<1x128xf32>
    %87 = vector.shape_cast %86 : vector<1x128xf32> to vector<128xf32>
    %88 = vector.shape_cast %85 : vector<128xf32> to vector<1x128xf32>
    tpu.vector_store %arg6[%c5, %c0_38], %88 {strides = array<i32>} : memref<8x128xf32, #tpu.memory_space<vmem>>, vector<1x128xf32>,
    %cst_39 = arith.constant dense<0.000000e+00> : vector<128xf32>
    %89 = vector.multi_reduction <add>, %63, %cst_39 [0] : vector<4x128xf32> to vector<128xf32>
    %c6 = arith.constant 6 : index
    %c0_40 = arith.constant 0 : index
    %90 = vector.load %arg6[%c6, %c0_40] : memref<8x128xf32, #tpu.memory_space<vmem>>, vector<1x128xf32>
    %91 = vector.shape_cast %90 : vector<1x128xf32> to vector<128xf32>
    %92 = vector.shape_cast %89 : vector<128xf32> to vector<1x128xf32>
    tpu.vector_store %arg6[%c6, %c0_40], %92 {strides = array<i32>} : memref<8x128xf32, #tpu.memory_space<vmem>>, vector<1x128xf32>,
    %cst_41 = arith.constant dense<0.000000e+00> : vector<128xf32>
    %93 = vector.multi_reduction <add>, %64, %cst_41 [0] : vector<4x128xf32> to vector<128xf32>
    %c7 = arith.constant 7 : index
    %c0_42 = arith.constant 0 : index
    %94 = vector.load %arg6[%c7, %c0_42] : memref<8x128xf32, #tpu.memory_space<vmem>>, vector<1x128xf32>
    %95 = vector.shape_cast %94 : vector<1x128xf32> to vector<128xf32>
    %96 = vector.shape_cast %93 : vector<128xf32> to vector<1x128xf32>
    tpu.vector_store %arg6[%c7, %c0_42], %96 {strides = array<i32>} : memref<8x128xf32, #tpu.memory_space<vmem>>, vector<1x128xf32>,
    return
  }
  func.func @transform_0(%arg0: i32) -> (i32, i32, i32) {
    %c0_i32 = arith.constant 0 : i32
    %c0_i32_0 = arith.constant 0 : i32
    %c0_i32_1 = arith.constant 0 : i32
    return %c0_i32, %arg0, %c0_i32_0 : i32, i32, i32
  }
  func.func @transform_1(%arg0: i32) -> (i32, i32, i32) {
    %c0_i32 = arith.constant 0 : i32
    %c0_i32_0 = arith.constant 0 : i32
    %c0_i32_1 = arith.constant 0 : i32
    return %c0_i32, %arg0, %c0_i32_0 : i32, i32, i32
  }
  func.func @transform_2(%arg0: i32) -> (i32, i32) {
    %c0_i32 = arith.constant 0 : i32
    %c0_i32_0 = arith.constant 0 : i32
    return %arg0, %c0_i32 : i32, i32
  }
  func.func @transform_3(%arg0: i32) -> (i32, i32) {
    %c0_i32 = arith.constant 0 : i32
    %c0_i32_0 = arith.constant 0 : i32
    return %arg0, %c0_i32 : i32, i32
  }
  func.func @transform_4(%arg0: i32) -> (i32, i32) {
    %c0_i32 = arith.constant 0 : i32
    %c0_i32_0 = arith.constant 0 : i32
    return %arg0, %c0_i32 : i32, i32
  }
  func.func @transform_5(%arg0: i32) -> (i32, i32) {
    %c0_i32 = arith.constant 0 : i32
    %c0_i32_0 = arith.constant 0 : i32
    return %arg0, %c0_i32 : i32, i32
  }
}

</mosaic_0001>

<bundles_post_ra>
// kernel: tpu_custom_call.1
= control target key start
LH: loop header
LB: loop body
LE: loop exit
PB: predicated region body
PF: predicated region fallthrough
CT: control target
= control target key end

     0   :  { %10 = vsyncpa [#allocation3], 0  ;;  %s695_s0 = inlined_call_operand.hbm [shape: f32[8,4,128], index: 0, kind: input, shape index: {}]   ;;  %s696_s1 = inlined_call_operand.hbm [shape: f32[8,4,128], index: 1, kind: input, shape index: {}]   ;;  %s697_s2 = inlined_call_operand.hbm [shape: f32[4,128], index: 2, kind: input, shape index: {}]   ;;  %s698_s3 = inlined_call_operand.hbm [shape: f32[4,128], index: 3, kind: input, shape index: {}]   ;;  %s699_s4 = inlined_call_operand.hbm [shape: f32[4,128], index: 4, kind: input, shape index: {}]   ;;  %s700_s5 = inlined_call_operand.hbm [shape: f32[8,128], index: 5, kind: output, shape index: {}]  }
   0x1   :  { %11 = vsyncpa [#allocation6], 0 }
   0x2   :  { %12 = vsyncpa [#allocation9], 0 }
   0x3   :  { %13 = vsyncpa [#allocation4], 0  ;;  %s31_s20 = sshll.u32 %s696_s1, 4  ;;  %s525_s21 = smov [#allocation5]   ;;  %s32_s20 = int_to_ptr.hbm [resolvable:$true] %s31_s20 }
   0x4   :  { %s33_s22 = sshll.u32 %s525_s21, 4  ;;  %s56_s25 = sshll.u32 %s698_s3, 4  ;;  %s34_s22 = int_to_ptr.vmem [resolvable:$true] %s33_s22  ;;  %s57_s25 = int_to_ptr.hbm [resolvable:$true] %s56_s25 }
   0x5   :  { %s526_s26 = smov 64   ;;  %s527_s27 = smov 4  }
   0x6   :  { %39 = dma.hbm_to_vmem [thread:$0]  %s32_s20, 512, %s34_s22, [#allocation6], %s526_s26, %s526_s26, %s527_s27  }
   0x7   :  { %s528_s28 = smov [#allocation8]   ;;  %s18_s7 = sshll.u32 %s695_s0, 4  ;;  %s19_s7 = int_to_ptr.hbm [resolvable:$true] %s18_s7 }
   0x8   :  { %s58_s29 = sshll.u32 %s528_s28, 4  ;;  %s45_s9 = sshll.u32 %s697_s2, 4  ;;  %s59_s29 = int_to_ptr.vmem [resolvable:$true] %s58_s29  ;;  %s46_s9 = int_to_ptr.hbm [resolvable:$true] %s45_s9 }
   0x9   :  { %61 = dma.hbm_to_vmem [thread:$0]  %s57_s25, 64, %s59_s29, [#allocation9]  }
   0xa   :  { %s529_s10 = smov [#allocation2]   ;;  %s530_s3 = smov [#allocation7]  }
   0xb   :  { %s20_s11 = sshll.u32 %s529_s10, 4  ;;  %s47_s12 = sshll.u32 %s530_s3, 4  ;;  %s21_s11 = int_to_ptr.vmem [resolvable:$true] %s20_s11  ;;  %s48_s12 = int_to_ptr.vmem [resolvable:$true] %s47_s12 }
   0xc   :  { %26 = dma.hbm_to_vmem [thread:$0]  %s19_s7, 512, %s21_s11, [#allocation3], %s526_s26, %s526_s26, %s527_s27  }
   0xd   :  { %s67_s15 = sshll.u32 %s699_s4, 4  ;;  %s531_s0 = smov [#allocation10]   ;;  %s68_s15 = int_to_ptr.hbm [resolvable:$true] %s67_s15 }
   0xe   :  { %50 = dma.hbm_to_vmem [thread:$0]  %s46_s9, 64, %s48_s12, [#allocation6]  }
   0xf   :  { %s69_s16 = sshll.u32 %s531_s0, 4  ;;  %s70_s16 = int_to_ptr.vmem [resolvable:$true] %s69_s16 }
  0x10   :  { %72 = dma.hbm_to_vmem [thread:$0]  %s68_s15, 64, %s70_s16, [#allocation9]  }
  0x11   :  { %517 = dma.done.wait [#allocation3], 512  }
  0x12   :  { %518 = vsyncadd [#allocation3], 4294966784 }
  0x13   :  { %519 = dma.done.wait [#allocation6], 576  }
  0x14   :  { %520 = vsyncadd [#allocation6], 4294966720 }
  0x15   :  { %521 = dma.done.wait [#allocation9], 128  }
  0x16   :  { %522 = vsyncadd [#allocation9], 4294967168  ;;  %v111_v0 = vlaneseq  ;;  %v121_v1 = vld [vmem:[#allocation10] sm:$0xf]  ;;  %vm130_vm0 = vcmask 1043456   ;;  %s533_s2 = smov [#allocation11]  }
  0x17   :  { %v341_v2 = vadd.f32 -125000.0, %v121_v1  ;;  %v579_v5 = vld [vmem:[#allocation2] sm:$0xf]  ;;  %v94_v6 = vld [vmem:[#allocation2 + $0x4] sm:$0xf] }
  0x18   :  { %v112_v3 = vshrl.u32 %v111_v0, 7  ;;  %v95_v7 = vld [vmem:[#allocation2 + $0x8] sm:$0xf]  ;;  %v96_v8 = vld [vmem:[#allocation2 + $0xc] sm:$0xf]  ;;  %v114_v14 = vand.u32 127, %v111_v0 }
  0x19   :  { %v123_v4 = vmul.f32 1.3846547e-05, %v341_v2  ;;  %v97_v9 = vld [vmem:[#allocation2 + $0x10] sm:$0xf]  ;;  %v98_v11 = vld [vmem:[#allocation2 + $0x14] sm:$0xf] }
  0x1a   :  { %v99_v12 = vld [vmem:[#allocation2 + $0x18] sm:$0xf]  ;;  %v100_v13 = vld [vmem:[#allocation2 + $0x1c] sm:$0xf]  ;;  %v116_v15 = vmul.u32 128, %v112_v3  ;;  %v131_v16 = vsel %vm130_vm0, %v579_v5, -inf }
  0x1b   :  { %v124_v10 = vmul.f32 %v123_v4, %v123_v4  ;;  %v132_v18 = vsel %vm130_vm0, %v94_v6, -inf  ;;  %v133_v19 = vsel %vm130_vm0, %v95_v7, -inf  ;;  %v134_v20 = vsel %vm130_vm0, %v96_v8, -inf  ;;  %v590_v26 = vld [vmem:[#allocation5] sm:$0xf]  ;;  %s327_s4 = sshll.u32 %s533_s2, 4  ;;  %s328_s4 = int_to_ptr.vmem [resolvable:$true] %s327_s4 }
  0x1c   :  { %v135_v21 = vsel %vm130_vm0, %v97_v9, -inf  ;;  %v137_v22 = vsel %vm130_vm0, %v98_v11, -inf  ;;  %v139_v23 = vsel %vm130_vm0, %v99_v12, -inf  ;;  %v141_v24 = vsel %vm130_vm0, %v100_v13, -inf  ;;  %v102_v27 = vld [vmem:[#allocation5 + $0x4] sm:$0xf] }
  0x1d   :  { %v125_v17 = vsub.f32 0.0, %v124_v10  ;;  %v136_v28 = vmax.f32 %v131_v16, %v135_v21  ;;  %v138_v29 = vmax.f32 %v132_v18, %v137_v22  ;;  %v140_v30 = vmax.f32 %v133_v19, %v139_v23  ;;  %v103_v34 = vld [vmem:[#allocation5 + $0x8] sm:$0xf]  ;;  %v597_v38 = vld [vmem:[#allocation5 + $0xc] sm:$0xf]  ;;  %s329_s19 = sshll.u32 %s700_s5, 4  ;;  %s330_s19 = int_to_ptr.hbm [resolvable:$true] %s329_s19 }
  0x1e   :  { %v142_v31 = vmax.f32 %v134_v20, %v141_v24  ;;  %v592_v32 = vadd.s32 %v116_v15, %v114_v14  ;;  %v187_v36 = vsel %vm130_vm0, %v590_v26, 0.0  ;;  %v188_v37 = vsel %vm130_vm0, %v102_v27, 0.0  ;;  %v109_v40 = vld [vmem:[#allocation7] sm:$0xf]  ;;  %v602_v48 = vld [vmem:[#allocation5 + $0x10] sm:$0xf] }
  0x1f   :  { %v126_v25 = vmul.f32 1.442695, %v125_v17  ;;  %v143_v33 = vmax.f32 %v136_v28, %v138_v29  ;;  %v189_v41 = vadd.f32 %v188_v37, %v187_v36  ;;  %v190_v42 = vsel %vm130_vm0, %v103_v34, 0.0  ;;  %v621_v62 = vld [vmem:[#allocation5 + $0x14] sm:$0xf] }
  0x20   :  { %v144_v35 = vmax.f32 %v140_v30, %v142_v31  ;;  %vm120_vm1 = vcmp.lt.s32.totalorder %v592_v32, 512  ;;  %v192_v51 = vsel %vm130_vm0, %v597_v38, 0.0  ;;  %v610_v52 = vsel %vm130_vm0, %v590_v26, -inf }
  0x21   :  { %353 = vpow2.f32 %v126_v25  ;;  %v191_v59 = vadd.f32 %v190_v42, %v189_v41  ;;  %v615_v60 = vsel %vm130_vm0, %v102_v27, -inf  ;;  %v232_v3 = vsel %vm130_vm0, %v602_v48, -inf }
  0x22   :  { %v145_v39 = vmax.f32 %v143_v33, %v144_v35  ;;  %v230_v14 = vsel %vm130_vm0, %v103_v34, -inf  ;;  %v233_v16 = vmax.f32 %v610_v52, %v232_v3 }
  0x24   :  { %v146_v43 = vsub.f32 %v579_v5, %v145_v39  ;;  %v147_v44 = vsub.f32 %v94_v6, %v145_v39  ;;  %v148_v45 = vsub.f32 %v95_v7, %v145_v39  ;;  %v149_v46 = vsub.f32 %v96_v8, %v145_v39  ;;  %v630_v6 = vld [vmem:[#allocation5 + $0x18] sm:$0xf] }
  0x25   :  { %v150_v49 = vsub.f32 %v97_v9, %v145_v39  ;;  %v604_v50 = vsub.f32 %v98_v11, %v145_v39  ;;  %v612_v57 = vsub.f32 %v99_v12, %v145_v39  ;;  %v623_v63 = vsub.f32 %v100_v13, %v145_v39 }
  0x26   :  { %v154_v54 = vmul.f32 1.442695, %v146_v43  ;;  %v156_v55 = vmul.f32 1.442695, %v147_v44  ;;  %v158_v56 = vmul.f32 1.442695, %v148_v45  ;;  %v203_v7 = vmul.f32 %v146_v43, %v590_v26 }
  0x27   :  { %v354_v47 = vpop.eup %353  ;;  %v160_v58 = vmul.f32 1.442695, %v149_v46  ;;  %v162_v0 = vmul.f32 1.442695, %v150_v49  ;;  %v164_v2 = vmul.f32 1.442695, %v604_v50  ;;  %v204_v8 = vmul.f32 %v147_v44, %v102_v27 }
  0x28   :  { %v128_v53 = vmul.f32 %v354_v47, %v109_v40  ;;  %355 = vpow2.f32 %v154_v54  ;;  %v166_v9 = vmul.f32 1.442695, %v612_v57  ;;  %v205_v10 = vmul.f32 %v148_v45, %v103_v34  ;;  %v108_v34 = vld [vmem:[#allocation5 + $0x1c] sm:$0xf] }
  0x29   :  { %357 = vpow2.f32 %v156_v55  ;;  %v234_v11 = vsel %vm130_vm0, %v621_v62, -inf  ;;  %v168_v13 = vmul.f32 1.442695, %v623_v63  ;;  %v206_v15 = vmul.f32 %v149_v46, %v597_v38 }
  0x2a   :  { %v619_v61 = vsel %vm120_vm1, %v128_v53, 0.0  ;;  %359 = vpow2.f32 %v158_v56  ;;  %v236_v17 = vsel %vm130_vm0, %v630_v6, -inf  ;;  %v211_v20 = vsel %vm130_vm0, %v203_v7, 0.0 }
  0x2b   :  { %v258_v1 = vsel %vm130_vm0, %v619_v61, 0.0  ;;  %361 = vpow2.f32 %v160_v58  ;;  %v212_v21 = vsel %vm130_vm0, %v204_v8, 0.0  ;;  %v235_v22 = vmax.f32 %v615_v60, %v234_v11  ;;  %v110_v58 = vld [vmem:[#allocation8] sm:$0xf] }
  0x2c   :  { %v259_v4 = vrot.slane %v258_v1, 4  ;;  %363 = vpow2.f32 %v162_v0  ;;  %v213_v25 = vadd.f32 %v212_v21, %v211_v20  ;;  %v214_v27 = vsel %vm130_vm0, %v205_v10, 0.0 }
  0x2d   :  { %365 = vpow2.f32 %v164_v2  ;;  %v207_v31 = vmul.f32 %v150_v49, %v602_v48  ;;  %v216_v39 = vsel %vm130_vm0, %v206_v15, 0.0  ;;  %v193_v43 = vadd.f32 %v192_v51, %v191_v59 }
  0x2e   :  { %v260_v12 = vadd.f32 %v259_v4, %v258_v1  ;;  %v356_v18 = vpop.eup %355  ;;  %367 = vpow2.f32 %v166_v9  ;;  %v215_v37 = vadd.f32 %v214_v27, %v213_v25  ;;  %v231_v44 = vsel %vm130_vm0, %v597_v38, -inf }
  0x2f   :  { %v358_v23 = vpop.eup %357  ;;  %v170_v24 = vsel %vm130_vm0, %v356_v18, 0.0  ;;  %369 = vpow2.f32 %v168_v13  ;;  %v194_v47 = vsel %vm130_vm0, %v602_v48, 0.0  ;;  %v208_v49 = vmul.f32 %v604_v50, %v621_v62 }
  0x30   :  { %v261_v19 = vrot.slane %v260_v12, 2  ;;  %v360_v28 = vpop.eup %359  ;;  %v171_v30 = vsel %vm130_vm0, %v358_v23, 0.0  ;;  %v237_v52 = vmax.f32 %v230_v14, %v236_v17  ;;  %v217_v55 = vadd.f32 %v216_v39, %v215_v37 }
  0x31   :  { %v362_v33 = vpop.eup %361  ;;  %v172_v35 = vadd.f32 %v171_v30, %v170_v24  ;;  %v173_v36 = vsel %vm130_vm0, %v360_v28, 0.0  ;;  %v238_v56 = vsel %vm130_vm0, %v108_v34, -inf  ;;  %v218_v38 = vsel %vm130_vm0, %v207_v31, 0.0 }
  0x32   :  { %v262_v29 = vadd.f32 %v261_v19, %v260_v12  ;;  %v364_v40 = vpop.eup %363  ;;  %v175_v42 = vsel %vm130_vm0, %v362_v33, 0.0  ;;  %v239_v60 = vmax.f32 %v231_v44, %v238_v56  ;;  %v240_v0 = vmax.f32 %v233_v16, %v235_v22 }
  0x33   :  { %v366_v45 = vpop.eup %365  ;;  %v174_v46 = vadd.f32 %v173_v36, %v172_v35  ;;  %v177_v54 = vsel %vm130_vm0, %v364_v40, 0.0  ;;  %v195_v2 = vadd.f32 %v194_v47, %v193_v43  ;;  %v196_v50 = vsel %vm130_vm0, %v621_v62, 0.0 }
  0x34   :  { %v263_v41 = vrot.slane %v262_v29, 1  ;;  %v368_v51 = vpop.eup %367  ;;  %v179_v48 = vsel %vm130_vm0, %v366_v45, 0.0  ;;  %v209_v4 = vmul.f32 %v612_v57, %v630_v6  ;;  %v241_v7 = vmax.f32 %v237_v52, %v239_v60 }
  0x35   :  { %v176_v59 = vadd.f32 %v175_v42, %v174_v46  ;;  %v370_v1 = vpop.eup %369  ;;  %v343_v8 = vadd.f32 -125000.0, %v110_v58  ;;  %v181_v9 = vsel %vm130_vm0, %v368_v51, 0.0  ;;  %v219_v10 = vadd.f32 %v218_v38, %v217_v55 }
  0x36   :  { %v264_v53 = vadd.f32 %v263_v41, %v262_v29  ;;  %v220_v11 = vsel %vm130_vm0, %v208_v49, 0.0  ;;  %v246_v12 = vsub.f32 1.0, %v579_v5  ;;  %v242_v14 = vmax.f32 %v240_v0, %v241_v7 }
  0x37   :  { %v178_v3 = vadd.f32 %v177_v54, %v176_v59  ;;  %v249_v15 = vmul.f32 1e-05, %v343_v8  ;;  %v183_v16 = vsel %vm130_vm0, %v370_v1, 0.0  ;;  %v197_v17 = vadd.f32 %v196_v50, %v195_v2 }
  0x38   :  { %265 = vst [vmem:[#allocation11] sm:$0x1] %v264_v53  ;;  %v198_v18 = vsel %vm130_vm0, %v630_v6, 0.0  ;;  %v210_v57 = vmul.f32 %v623_v63, %v108_v34  ;;  %vm243_vm2 = vcmp.ge.f32.partialorder %v590_v26, %v242_v14  ;;  %v221_v19 = vadd.f32 %v220_v11, %v219_v10 }
  0x39   :  { %v180_v13 = vadd.f32 %v179_v48, %v178_v3  ;;  %v532_v20 = vmov 0.0   ;;  %v247_v5 = vsel %vm120_vm1, %v246_v12, 0.0  ;;  %v250_v22 = vsel %vm120_vm1, %v249_v15, 0.0 }
  0x3a   :  { %v342_v21 = vsel %vm243_vm2, 1.0, %v532_v20  ;;  %v222_v24 = vsel %vm130_vm0, %v209_v4, 0.0  ;;  %v199_v27 = vadd.f32 %v198_v18, %v197_v17  ;;  %v200_v28 = vsel %vm130_vm0, %v108_v34, 0.0 }
  0x3b   :  { %v182_v62 = vadd.f32 %v181_v9, %v180_v13  ;;  %v251_v25 = vmul.f32 %v342_v21, %v619_v61  ;;  %v223_v29 = vadd.f32 %v222_v24, %v221_v19  ;;  %v224_v30 = vsel %vm130_vm0, %v210_v57, 0.0 }
  0x3c   :  { %v201_v43 = vadd.f32 %v200_v28, %v199_v27 }
  0x3d   :  { %v184_v23 = vadd.f32 %v183_v16, %v182_v62  ;;  %v274_v63 = vsel %vm130_vm0, %v251_v25, 0.0  ;;  %v252_v6 = vmul.f32 %v251_v25, %v247_v5  ;;  %v253_v26 = vmul.f32 %v251_v25, %v250_v22 }
  0x3e   :  { %v275_v31 = vrot.slane %v274_v63, 4  ;;  %v225_v53 = vadd.f32 %v224_v30, %v223_v29 }
  0x3f   :  { %371 = vlog2.f32 %v184_v23  ;;  %v282_v33 = vsel %vm130_vm0, %v252_v6, 0.0  ;;  %v290_v35 = vsel %vm130_vm0, %v253_v26, 0.0  ;;  %v255_v36 = vmul.f32 %v252_v6, %v250_v22 }
  0x40   :  { %v256_v37 = vmul.f32 %v252_v6, %v247_v5  ;;  %v276_v39 = vadd.f32 %v275_v31, %v274_v63  ;;  %v283_v40 = vrot.slane %v282_v33, 4  ;;  %v291_v41 = vrot.slane %v290_v35, 4 }
  0x41   :  { %v257_v42 = vmul.f32 %v253_v26, %v250_v22  ;;  %v298_v44 = vsel %vm130_vm0, %v255_v36, 0.0 }
  0x42   :  { %v306_v45 = vsel %vm130_vm0, %v256_v37, 0.0  ;;  %v277_v34 = vrot.slane %v276_v39, 2  ;;  %v284_v46 = vadd.f32 %v283_v40, %v282_v33  ;;  %v292_v47 = vadd.f32 %v291_v41, %v290_v35 }
  0x43   :  { %v299_v49 = vrot.slane %v298_v44, 4  ;;  %v307_v54 = vrot.slane %v306_v45, 4  ;;  %v314_v55 = vsel %vm130_vm0, %v257_v42, 0.0 }
  0x44   :  { %v278_v58 = vadd.f32 %v277_v34, %v276_v39  ;;  %v285_v51 = vrot.slane %v284_v46, 2  ;;  %v293_v59 = vrot.slane %v292_v47, 2  ;;  %v315_v0 = vrot.slane %v314_v55, 4 }
  0x45   :  { %v372_v52 = vpop.eup %371  ;;  %v300_v38 = vadd.f32 %v299_v49, %v298_v44  ;;  %v308_v60 = vadd.f32 %v307_v54, %v306_v45 }
  0x46   :  { %v186_v56 = vmul.f32 0.6931472, %v372_v52  ;;  %v279_v48 = vrot.slane %v278_v58, 1  ;;  %v286_v2 = vadd.f32 %v285_v51, %v284_v46  ;;  %v294_v50 = vadd.f32 %v293_v59, %v292_v47 }
  0x47   :  { %v301_v3 = vrot.slane %v300_v38, 2  ;;  %v309_v4 = vrot.slane %v308_v60, 2  ;;  %v316_v7 = vadd.f32 %v315_v0, %v314_v55 }
  0x48   :  { %v202_v1 = vmul.f32 %v201_v43, %v186_v56  ;;  %v280_v9 = vadd.f32 %v279_v48, %v278_v58  ;;  %v287_v10 = vrot.slane %v286_v2, 1  ;;  %v295_v11 = vrot.slane %v294_v50, 1 }
  0x49   :  { %v302_v12 = vadd.f32 %v301_v3, %v300_v38  ;;  %v310_v13 = vadd.f32 %v309_v4, %v308_v60  ;;  %v317_v14 = vrot.slane %v316_v7, 2 }
  0x4a   :  { %v226_v8 = vsub.f32 %v202_v1, %v225_v53  ;;  %281 = vst [vmem:[#allocation11 + $0x2] sm:$0x1] %v280_v9  ;;  %v288_v16 = vadd.f32 %v287_v10, %v286_v2  ;;  %v296_v17 = vadd.f32 %v295_v11, %v294_v50 }
  0x4b   :  { %v303_v18 = vrot.slane %v302_v12, 1  ;;  %v311_v57 = vrot.slane %v310_v13, 1  ;;  %v318_v19 = vadd.f32 %v317_v14, %v316_v7 }
  0x4c   :  { %v227_v15 = vsel %vm120_vm1, %v226_v8, 0.0  ;;  %289 = vst [vmem:[#allocation11 + $0x3] sm:$0x1] %v288_v16 }
  0x4d   :  { %v254_v62 = vmul.f32 %v227_v15, %v619_v61  ;;  %297 = vst [vmem:[#allocation11 + $0x4] sm:$0x1] %v296_v17  ;;  %v304_v21 = vadd.f32 %v303_v18, %v302_v12  ;;  %v312_v5 = vadd.f32 %v311_v57, %v310_v13  ;;  %v319_v22 = vrot.slane %v318_v19, 1 }
  0x4f   :  { %v266_v20 = vsel %vm130_vm0, %v254_v62, 0.0  ;;  %305 = vst [vmem:[#allocation11 + $0x5] sm:$0x1] %v304_v21  ;;  %v320_v24 = vadd.f32 %v319_v22, %v318_v19 }
  0x50   :  { %v267_v23 = vrot.slane %v266_v20, 4  ;;  %313 = vst [vmem:[#allocation11 + $0x6] sm:$0x1] %v312_v5 }
  0x51   :  { %321 = vst [vmem:[#allocation11 + $0x7] sm:$0x1] %v320_v24 }
  0x52   :  { %v268_v32 = vadd.f32 %v267_v23, %v266_v20 }
  0x54   :  { %v269_v25 = vrot.slane %v268_v32, 2 }
  0x56   :  { %v270_v27 = vadd.f32 %v269_v25, %v268_v32 }
  0x58   :  { %v271_v61 = vrot.slane %v270_v27, 1 }
  0x5a   :  { %v272_v63 = vadd.f32 %v271_v61, %v270_v27 }
  0x5c   :  { %273 = vst [vmem:[#allocation11 + $0x1] sm:$0x1] %v272_v63 }
  0x5d   :  { %332 = dma.vmem_to_hbm [thread:$0]  %s328_s4, 128, %s330_s19, [#allocation4]  }
  0x5e   :  { %523 = dma.done.wait [#allocation4], 128  }
  0x5f   :  { %524 = vsyncadd [#allocation4], 4294967168 }
  0x60   :  { %337 = vsyncpa [#allocation3], 1 }
  0x61   :  { %338 = vsyncpa [#allocation6], 1 }
  0x62   :  { %339 = vsyncpa [#allocation9], 1 }
  0x63   :  { %340 = vsyncpa [#allocation4], 1 }

</bundles_post_ra>
